<compile_context>
chip_gen: v5e
topology: v5e:2x2
jax: 0.10.0
libtpu: 0.0.40
codegen_flags: <defaults>
</compile_context>

<pallas_src>
import jax
import jax.numpy as jnp
from jax.experimental import pallas as pl
from jax.experimental.pallas import tpu as pltpu


# ----------------------------- kernels --------------------------------------

def _mlp_kernel(x_ref, w1_ref, b1_ref, w2_ref, b2_ref, o_ref):
    # fc1 -> tanh -> fc2, one batch tile per grid step, weights VMEM-resident.
    h = jnp.dot(x_ref[...], w1_ref[...], preferred_element_type=jnp.float32)
    h = jnp.tanh(h + b1_ref[...])
    out = jnp.dot(h.astype(w2_ref.dtype), w2_ref[...],
                  preferred_element_type=jnp.float32)
    o_ref[...] = (out + b2_ref[...]).astype(o_ref.dtype)


def _mlp_fast_kernel(x_ref, bg_ref, w1x_ref, w1b_ref, b1_ref,
                     w2_ref, b2_ref, o_ref):
    # fc1 on the *virtual* concat [x, bg]: two MXU dots into one f32
    # accumulator (equivalent to cat((x, bg), -1) @ W1, without the concat).
    h = jnp.dot(x_ref[...], w1x_ref[...], preferred_element_type=jnp.float32)
    h = h + jnp.dot(bg_ref[...], w1b_ref[...],
                    preferred_element_type=jnp.float32)
    h = jnp.tanh(h + b1_ref[...])
    out = jnp.dot(h.astype(w2_ref.dtype), w2_ref[...],
                  preferred_element_type=jnp.float32)
    o_ref[...] = (out + b2_ref[...]).astype(o_ref.dtype)


# ----------------------------- wrappers --------------------------------------

def _round_up(n, m):
    return ((n + m - 1) // m) * m


def _batch_tiling(batch, block_b):
    # Batch tile: multiple of 8 sublanes, at most `block_b` rows per MXU pass.
    tb = min(block_b, _round_up(batch, 8))
    bp = _round_up(batch, tb)
    return tb, bp


def _pad_batch(a, bp):
    b = a.shape[0]
    return a if b == bp else jnp.pad(a, ((0, bp - b), (0, 0)))


def ode_mlp(x, w1, b1, w2, b2, *, block_b=128):
    """out = tanh(x @ w1 + b1) @ w2 + b2.

    x: (B, Din); w1: (Din, H); b1: (1, H); w2: (H, Dout); b2: (1, Dout).
    """
    B, Din = x.shape
    H = w1.shape[1]
    Dout = w2.shape[1]
    tb, bp = _batch_tiling(B, block_b)
    xp = _pad_batch(x, bp)

    out = pl.pallas_call(
        _mlp_kernel,
        out_shape=jax.ShapeDtypeStruct((bp, Dout), x.dtype),
        grid_spec=pl.GridSpec(
            grid=(bp // tb,),
            in_specs=[
                pl.BlockSpec((tb, Din), lambda i: (i, 0)),   # batch-tiled
                pl.BlockSpec((Din, H), lambda i: (0, 0)),    # resident weights
                pl.BlockSpec((1, H), lambda i: (0, 0)),
                pl.BlockSpec((H, Dout), lambda i: (0, 0)),
                pl.BlockSpec((1, Dout), lambda i: (0, 0)),
            ],
            out_specs=pl.BlockSpec((tb, Dout), lambda i: (i, 0)),
        ),
        compiler_params=pltpu.CompilerParams(
            dimension_semantics=("parallel",)),
    )(xp, w1, b1, w2, b2)
    return out[:B] if bp != B else out


def ode_mlp_fast(x, bg, w1_x, w1_bg, b1, w2, b2, *, block_b=128):
    """out = tanh(x @ w1_x + bg @ w1_bg + b1) @ w2 + b2  (fused concat)."""
    B, Dx = x.shape
    Dbg = bg.shape[1]
    H = w1_x.shape[1]
    Dout = w2.shape[1]
    tb, bp = _batch_tiling(B, block_b)
    xp = _pad_batch(x, bp)
    bgp = _pad_batch(bg, bp)

    out = pl.pallas_call(
        _mlp_fast_kernel,
        out_shape=jax.ShapeDtypeStruct((bp, Dout), x.dtype),
        grid_spec=pl.GridSpec(
            grid=(bp // tb,),
            in_specs=[
                pl.BlockSpec((tb, Dx), lambda i: (i, 0)),     # batch-tiled x
                pl.BlockSpec((tb, Dbg), lambda i: (i, 0)),    # batch-tiled bg
                pl.BlockSpec((Dx, H), lambda i: (0, 0)),      # resident weights
                pl.BlockSpec((Dbg, H), lambda i: (0, 0)),
                pl.BlockSpec((1, H), lambda i: (0, 0)),
                pl.BlockSpec((H, Dout), lambda i: (0, 0)),
                pl.BlockSpec((1, Dout), lambda i: (0, 0)),
            ],
            out_specs=pl.BlockSpec((tb, Dout), lambda i: (i, 0)),
        ),
        compiler_params=pltpu.CompilerParams(
            dimension_semantics=("parallel",)),
    )(xp, bgp, w1_x, w1_bg, b1, w2, b2)
    return out[:B] if bp != B else out


# ----------------------------- module ----------------------------------------

def _init_linear(key, fan_in, fan_out, dtype=jnp.float32):
    # Deterministic init mimicking torch.nn.Linear (uniform +/- 1/sqrt(fan_in)).
    kw, kb = jax.random.split(key)
    bound = 1.0 / jnp.sqrt(jnp.asarray(fan_in, dtype))
    w = jax.random.uniform(kw, (fan_in, fan_out), dtype, -bound, bound)  # (in,out)
    b = jax.random.uniform(kb, (1, fan_out), dtype, -bound, bound)
    return w, b


class NeuralODEfuncPallas:
    """JAX/Pallas equivalent of NeuralODEfunc."""

    def __init__(self, in_channels, feature_dim, nhidden, fast, key, net='MLP'):
        self.fast = fast
        self.net = net
        D = in_channels * feature_dim
        k1, k2 = jax.random.split(key)
        if fast:
            self.w1, self.b1 = _init_linear(k1, 3 * D, D)
            self.w2, self.b2 = _init_linear(k2, D, D)
            # Pre-split fc1 weights once so the fast path never builds the
            # (B, 3D) concat:  [x, bg] @ W1 == x @ W1[:D] + bg @ W1[D:].
            self.w1_x = self.w1[:D]
            self.w1_bg = self.w1[D:]
        else:
            self.w1, self.b1 = _init_linear(k1, D, nhidden)
            self.w2, self.b2 = _init_linear(k2, nhidden, D)
        self.nfe = 0  # NOTE: Python-side counter; not traced under jit.
        self.background = None

    def set_background(self, background):
        self.background = background

    def __call__(self, t, x):
        self.nfe += 1
        if self.fast:
            return ode_mlp_fast(x, self.background, self.w1_x, self.w1_bg,
                                self.b1, self.w2, self.b2)
        return ode_mlp(x, self.w1, self.b1, self.w2, self.b2)


# ----------------------------- tests ------------------------------------------

def _ref_forward(x, w1, b1, w2, b2):
    return jnp.tanh(x @ w1 + b1) @ w2 + b2


if __name__ == "__main__":
    key = jax.random.PRNGKey(0)
    k_x, k_bg, k_p1, k_p2, k_x2, k_bg2 = jax.random.split(key, 6)

    batch = 2
    in_channels = 4
    feature_dim = 8
    nhidden = 32
    D = in_channels * feature_dim  # 32

    x = jax.random.normal(k_x, (batch, D), jnp.float32)
    background = jax.random.normal(k_bg, (batch, 2 * D), jnp.float32)
    t = jnp.float32(0.0)

    # --- non-fast (MLP) path ---
    func_slow = NeuralODEfuncPallas(in_channels, feature_dim, nhidden,
                                    fast=False, key=k_p1)
    out_slow = jax.block_until_ready(func_slow(t, x))
    ref_slow = _ref_forward(x, func_slow.w1, func_slow.b1,
                            func_slow.w2, func_slow.b2)
    assert out_slow.shape == (batch, D)
    assert jnp.allclose(out_slow, ref_slow, atol=1e-5, rtol=1e-5)

    # --- fast path (fused concat with background) ---
    func_fast = NeuralODEfuncPallas(in_channels, feature_dim, nhidden,
                                    fast=True, key=k_p2)
    func_fast.set_background(background)
    out_fast = jax.block_until_ready(func_fast(t, x))
    xb = jnp.concatenate((x, background), axis=-1)
    ref_fast = _ref_forward(xb, func_fast.w1, func_fast.b1,
                            func_fast.w2, func_fast.b2)
    assert out_fast.shape == (batch, D)
    assert jnp.allclose(out_fast, ref_fast, atol=1e-5, rtol=1e-5)

    # --- larger batch: exercise batch tiling (grid > 1) + padding ---
    big_b = 130
    x_big = jax.random.normal(k_x2, (big_b, D), jnp.float32)
    bg_big = jax.random.normal(k_bg2, (big_b, 2 * D), jnp.float32)

    out_big_slow = jax.block_until_ready(
        ode_mlp(x_big, func_slow.w1, func_slow.b1, func_slow.w2, func_slow.b2))
    ref_big_slow = _ref_forward(x_big, func_slow.w1, func_slow.b1,
                                func_slow.w2, func_slow.b2)
    assert out_big_slow.shape == (big_b, D)
    assert jnp.allclose(out_big_slow, ref_big_slow, atol=1e-5, rtol=1e-5)

    func_fast.set_background(bg_big)
    out_big_fast = jax.block_until_ready(func_fast(t, x_big))
    ref_big_fast = _ref_forward(jnp.concatenate((x_big, bg_big), axis=-1),
                                func_fast.w1, func_fast.b1,
                                func_fast.w2, func_fast.b2)
    assert out_big_fast.shape == (big_b, D)
    assert jnp.allclose(out_big_fast, ref_big_fast, atol=1e-5, rtol=1e-5)

    print("KERNEL_OK")
</pallas_src>

<mosaic_0001>
module attributes {stable_mosaic.version = 11 : i64} {
  func.func @_mlp_kernel(%arg0: i32, %arg1: memref<8x32xf32, #tpu.memory_space<vmem>>, %arg2: memref<32x32xf32, #tpu.memory_space<vmem>>, %arg3: memref<1x32xf32, #tpu.memory_space<vmem>>, %arg4: memref<32x32xf32, #tpu.memory_space<vmem>>, %arg5: memref<1x32xf32, #tpu.memory_space<vmem>>, %arg6: memref<8x32xf32, #tpu.memory_space<vmem>>) attributes {dimension_semantics = [#tpu.dimension_semantics<parallel>], iteration_bounds = array<i64: 1>, scalar_prefetch = 0 : i64, scratch_operands = 0 : i64, tpu.core_type = #tpu.core_type<tc>, window_params = [{transform_indices = @transform_0, window_bounds = array<i64: 8, 32>}, {pipeline_mode = #tpu.pipeline_mode<synchronous>, transform_indices = @transform_1, window_bounds = array<i64: 32, 32>}, {pipeline_mode = #tpu.pipeline_mode<synchronous>, transform_indices = @transform_2, window_bounds = array<i64: 1, 32>}, {pipeline_mode = #tpu.pipeline_mode<synchronous>, transform_indices = @transform_3, window_bounds = array<i64: 32, 32>}, {pipeline_mode = #tpu.pipeline_mode<synchronous>, transform_indices = @transform_4, window_bounds = array<i64: 1, 32>}, {transform_indices = @transform_5, window_bounds = array<i64: 8, 32>}]} {
    %c0 = arith.constant 0 : index
    %c0_0 = arith.constant 0 : index
    %0 = vector.load %arg1[%c0, %c0_0] : memref<8x32xf32, #tpu.memory_space<vmem>>, vector<8x32xf32>
    %c0_1 = arith.constant 0 : index
    %c0_2 = arith.constant 0 : index
    %1 = vector.load %arg2[%c0_1, %c0_2] : memref<32x32xf32, #tpu.memory_space<vmem>>, vector<32x32xf32>
    %cst = arith.constant dense<0.000000e+00> : vector<8x32xf32>
    %2 = tpu.matmul %0, %1, %cst {dimension_numbers = #tpu.dot_dimension_numbers<[1], [0], [0], [1], [0, 0, 1, 1], [], []>} : vector<8x32xf32>, vector<32x32xf32>, vector<8x32xf32> -> vector<8x32xf32>
    %c0_3 = arith.constant 0 : index
    %c0_4 = arith.constant 0 : index
    %3 = vector.load %arg3[%c0_3, %c0_4] : memref<1x32xf32, #tpu.memory_space<vmem>>, vector<1x32xf32>
    %4 = vector.broadcast %3 : vector<1x32xf32> to vector<8x32xf32>
    %5 = arith.addf %2, %4 : vector<8x32xf32>
    %6 = math.tanh %5 : vector<8x32xf32>
    %c0_5 = arith.constant 0 : index
    %c0_6 = arith.constant 0 : index
    %7 = vector.load %arg4[%c0_5, %c0_6] : memref<32x32xf32, #tpu.memory_space<vmem>>, vector<32x32xf32>
    %cst_7 = arith.constant dense<0.000000e+00> : vector<8x32xf32>
    %8 = tpu.matmul %6, %7, %cst_7 {dimension_numbers = #tpu.dot_dimension_numbers<[1], [0], [0], [1], [0, 0, 1, 1], [], []>} : vector<8x32xf32>, vector<32x32xf32>, vector<8x32xf32> -> vector<8x32xf32>
    %c0_8 = arith.constant 0 : index
    %c0_9 = arith.constant 0 : index
    %9 = vector.load %arg5[%c0_8, %c0_9] : memref<1x32xf32, #tpu.memory_space<vmem>>, vector<1x32xf32>
    %10 = vector.broadcast %9 : vector<1x32xf32> to vector<8x32xf32>
    %11 = arith.addf %8, %10 : vector<8x32xf32>
    %c0_10 = arith.constant 0 : index
    %c0_11 = arith.constant 0 : index
    %12 = vector.load %arg6[%c0_10, %c0_11] : memref<8x32xf32, #tpu.memory_space<vmem>>, vector<8x32xf32>
    tpu.vector_store %arg6[%c0_10, %c0_11], %11 {strides = array<i32>} : memref<8x32xf32, #tpu.memory_space<vmem>>, vector<8x32xf32>,
    return
  }
  func.func @transform_0(%arg0: i32) -> (i32, i32) {
    %c0_i32 = arith.constant 0 : i32
    %c0_i32_0 = arith.constant 0 : i32
    return %arg0, %c0_i32 : i32, i32
  }
  func.func @transform_1(%arg0: i32) -> (i32, i32) {
    %c0_i32 = arith.constant 0 : i32
    %c0_i32_0 = arith.constant 0 : i32
    %c0_i32_1 = arith.constant 0 : i32
    return %c0_i32, %c0_i32_0 : i32, i32
  }
  func.func @transform_2(%arg0: i32) -> (i32, i32) {
    %c0_i32 = arith.constant 0 : i32
    %c0_i32_0 = arith.constant 0 : i32
    %c0_i32_1 = arith.constant 0 : i32
    return %c0_i32, %c0_i32_0 : i32, i32
  }
  func.func @transform_3(%arg0: i32) -> (i32, i32) {
    %c0_i32 = arith.constant 0 : i32
    %c0_i32_0 = arith.constant 0 : i32
    %c0_i32_1 = arith.constant 0 : i32
    return %c0_i32, %c0_i32_0 : i32, i32
  }
  func.func @transform_4(%arg0: i32) -> (i32, i32) {
    %c0_i32 = arith.constant 0 : i32
    %c0_i32_0 = arith.constant 0 : i32
    %c0_i32_1 = arith.constant 0 : i32
    return %c0_i32, %c0_i32_0 : i32, i32
  }
  func.func @transform_5(%arg0: i32) -> (i32, i32) {
    %c0_i32 = arith.constant 0 : i32
    %c0_i32_0 = arith.constant 0 : i32
    return %arg0, %c0_i32 : i32, i32
  }
}

</mosaic_0001>

<bundles_post_ra>
// kernel: tpu_custom_call.1
= control target key start
LH: loop header
LB: loop body
LE: loop exit
PB: predicated region body
PF: predicated region fallthrough
CT: control target
= control target key end

     0   :  { %10 = vsyncpa [#allocation3], 0  ;;  %s321_s0 = inlined_call_operand.hbm [shape: f32[8,32], index: 0, kind: input, shape index: {}]   ;;  %s322_s1 = inlined_call_operand.hbm [shape: f32[32,32], index: 1, kind: input, shape index: {}]   ;;  %s323_s2 = inlined_call_operand.vmem [shape: f32[1,32], index: 2, kind: input, shape index: {}]   ;;  %s324_s3 = inlined_call_operand.hbm [shape: f32[32,32], index: 3, kind: input, shape index: {}]   ;;  %s325_s4 = inlined_call_operand.vmem [shape: f32[1,32], index: 4, kind: input, shape index: {}]   ;;  %s326_s5 = inlined_call_operand.hbm [shape: f32[8,32], index: 5, kind: output, shape index: {}]  }
   0x1   :  { %11 = vsyncpa [#allocation6], 0  ;;  %s28_s20 = sshll.u32 %s322_s1, 4  ;;  %s29_s20 = int_to_ptr.hbm [resolvable:$true] %s28_s20 }
   0x2   :  { %12 = vsyncpa [#allocation4], 0  ;;  %s264_s21 = smov [#allocation5]   ;;  %s18_s25 = sshll.u32 %s321_s0, 4  ;;  %s19_s25 = int_to_ptr.hbm [resolvable:$true] %s18_s25 }
   0x3   :  { %s30_s22 = sshll.u32 %s264_s21, 4  ;;  %s265_s26 = smov 128   ;;  %s31_s22 = int_to_ptr.vmem [resolvable:$true] %s30_s22 }
   0x4   :  { %s266_s27 = smov 8   ;;  %s267_s28 = smov [#allocation2]  }
   0x5   :  { %36 = dma.hbm_to_vmem [thread:$0]  %s29_s20, 512, %s31_s22, [#allocation6], %s265_s26, %s265_s26, %s266_s27  }
   0x6   :  { %s20_s29 = sshll.u32 %s267_s28, 4  ;;  %s43_s7 = sshll.u32 %s324_s3, 4  ;;  %s21_s29 = int_to_ptr.vmem [resolvable:$true] %s20_s29  ;;  %s44_s7 = int_to_ptr.hbm [resolvable:$true] %s43_s7 }
   0x7   :  { %23 = dma.hbm_to_vmem [thread:$0]  %s19_s25, 128, %s21_s29, [#allocation3]  }
   0x8   :  { %s268_s1 = smov [#allocation7]  }
   0x9   :  { %s45_s8 = sshll.u32 %s268_s1, 4  ;;  %s46_s8 = int_to_ptr.vmem [resolvable:$true] %s45_s8 }
   0xa   :  { %51 = dma.hbm_to_vmem [thread:$0]  %s44_s7, 512, %s46_s8, [#allocation6], %s265_s26, %s265_s26, %s266_s27  }
   0xb   :  { %258 = dma.done.wait [#allocation3], 128  }
   0xc   :  { %259 = vsyncadd [#allocation3], 4294967168 }
   0xd   :  { %260 = dma.done.wait [#allocation6], 1024  }
   0xe   :  { %261 = vsyncadd [#allocation6], 4294966272  ;;  %v70_v0 = vld [vmem:[#allocation5 + $0x18] sm:$0xff]  ;;  %v69_v1 = vld [vmem:[#allocation5 + $0x10] sm:$0xff]  ;;  %vm75_vm0 = vcmask 261120   ;;  %s269_s11 = smov [#allocation8]  }
   0xf   :  { %91 = vmatpush.msra.mxu0 %v70_v0  ;;  %v68_v2 = vld [vmem:[#allocation5 + $0x8] sm:$0xff]  ;;  %v67_v3 = vld [vmem:[#allocation5] sm:$0xff]  ;;  %v66_v4 = vld [vmem:[#allocation2] sm:$0xff]  ;;  %s137_s12 = sshll.u32 %s269_s11, 4  ;;  %s139_s15 = sshll.u32 %s326_s5, 4  ;;  %s138_s12 = int_to_ptr.vmem [resolvable:$true] %s137_s12  ;;  %s140_s15 = int_to_ptr.hbm [resolvable:$true] %s139_s15 }
  0x10   :  { %v103_v5 = vld [vmem:[#allocation7 + $0x18] sm:$0xff]  ;;  %v102_v6 = vld [vmem:[#allocation7 + $0x10] sm:$0xff]  ;;  %v101_v7 = vld [vmem:[#allocation7 + $0x8] sm:$0xff] }
  0x11   :  { %92 = vmatpush.msra.mxu0 %v69_v1  ;;  %123 = vmatpush.msra.mxu1 %v103_v5  ;;  %v100_v8 = vld [vmem:[#allocation7] sm:$0xff]  ;;  %v158_v9 = vld [vmem:[%s323_s2] ss:$0 sm:$0xff] }
  0x12   :  { %v159_v13 = vld [vmem:[%s325_s4] ss:$0 sm:$0xff] }
  0x13   :  { %93 = vmatpush.msra.mxu0 %v68_v2  ;;  %124 = vmatpush.msra.mxu1 %v102_v6 }
  0x15   :  { %94 = vmatpush.msra.mxu0 %v67_v3  ;;  %125 = vmatpush.msra.mxu1 %v101_v7 }
  0x16   :  { %150 = vmatmul.msk.f32.vlgmr.msra.gmra.mxu0 %vm75_vm0, %v66_v4 }
  0x17   :  { %126 = vmatpush.msra.mxu1 %v100_v8 }
  0x93   :  { %v96_v10 = vpop.f32.mrf.mxu0 }
  0x94   :  { %v97_v11 = vadd.f32 %v158_v9, %v96_v10 }
  0x96   :  { %160 = vtanh.f32 %v97_v11 }
  0x9c   :  { %v161_v12 = vpop.eup %160 }
  0x9d   :  { %151 = vmatmul.msk.f32.vlgmr.msra.gmra.mxu1 %vm75_vm0, %v161_v12 }
 0x11a   :  { %v128_v14 = vpop.f32.mrf.mxu1 }
 0x11b   :  { %v129_v15 = vadd.f32 %v159_v13, %v128_v14 }
 0x11d   :  { %131 = vst.msk [vmem:[#allocation8] sm:$0xff] %vm75_vm0, %v129_v15 }
 0x11e   :  { %142 = dma.vmem_to_hbm [thread:$0]  %s138_s12, 128, %s140_s15, [#allocation4]  }
 0x11f   :  { %262 = dma.done.wait [#allocation4], 128  }
 0x120   :  { %263 = vsyncadd [#allocation4], 4294967168 }
 0x121   :  { %147 = vsyncpa [#allocation3], 1 }
 0x122   :  { %148 = vsyncpa [#allocation6], 1 }
 0x123   :  { %149 = vsyncpa [#allocation4], 1 }

</bundles_post_ra>
